<compile_context>
chip_gen: v6e
topology: v6e:2x2x1
jax: 0.10.0
libtpu: 0.0.40
codegen_flags: <defaults>
</compile_context>

<pallas_src>
import functools

import jax
import jax.numpy as jnp
from jax.experimental import pallas as pl
from jax.experimental.pallas import tpu as pltpu

HIDDEN = 128


def _round_up(x, m):
    return ((x + m - 1) // m) * m


def dqn_kernel(x_ref, w1_ref, b1_ref, w2_ref, b2_ref, w3t_ref, b3t_ref, o_ref,
               *, bf16=False):
    mxu_dt = jnp.bfloat16 if bf16 else jnp.float32
    x = x_ref[...].astype(mxu_dt)

    # Layer 1: Linear(input_dim, 128) + ReLU  (MXU matmul, f32 accumulate)
    h1 = jnp.dot(x, w1_ref[...].astype(mxu_dt),
                 preferred_element_type=jnp.float32) + b1_ref[...]
    h1 = jnp.maximum(h1, 0.0)

    # Layer 2: Linear(128, 128) + ReLU
    h2 = jnp.dot(h1.astype(mxu_dt), w2_ref[...].astype(mxu_dt),
                 preferred_element_type=jnp.float32) + b2_ref[...]
    h2 = jnp.maximum(h2, 0.0)

    # Layer 3: Linear(128, action_dim), emitted transposed as (out_sub, tile_b)
    # so the tiny action axis sits on sublanes and batch is lane-dense:
    #   out_t[o, b] = sum_h w3t[o, h] * h2[b, h]   (== (h2 @ w3)[b, o])
    out_t = jax.lax.dot_general(
        w3t_ref[...].astype(mxu_dt), h2.astype(mxu_dt),
        dimension_numbers=(((1,), (1,)), ((), ())),
        preferred_element_type=jnp.float32)
    o_ref[...] = (out_t + b3t_ref[...]).astype(o_ref.dtype)


def init_params(key, input_dim, action_dim, hidden=HIDDEN):
    """PyTorch-style uniform(-1/sqrt(fan_in), 1/sqrt(fan_in)) init.
    Weights stored as (in, out) so forward is y = x @ W + b."""
    def linear(k, fan_in, fan_out):
        kw, kb = jax.random.split(k)
        bound = 1.0 / jnp.sqrt(fan_in)
        w = jax.random.uniform(kw, (fan_in, fan_out), jnp.float32, -bound, bound)
        b = jax.random.uniform(kb, (1, fan_out), jnp.float32, -bound, bound)
        return w, b

    k1, k2, k3 = jax.random.split(key, 3)
    w1, b1 = linear(k1, input_dim, hidden)
    w2, b2 = linear(k2, hidden, hidden)
    w3, b3 = linear(k3, hidden, action_dim)
    return (w1, b1, w2, b2, w3, b3)


def prepare_params(params):
    """One-time (cacheable) kernel-layout prep: the last layer is stored
    transposed and zero-padded to a multiple of 8 output rows.
    Call once after init / target-network copy, NOT per forward."""
    w1, b1, w2, b2, w3, b3 = params
    action_dim = w3.shape[1]
    out_sub = _round_up(action_dim, 8)
    w3t = jnp.zeros((out_sub, HIDDEN), jnp.float32).at[:action_dim, :].set(w3.T)
    b3t = jnp.zeros((out_sub, 1), jnp.float32).at[:action_dim, 0].set(b3.reshape(-1))
    return (w1, b1, w2, b2, w3t, b3t)


def _footprint_bytes(tile_b, input_dim, out_sub):
    """Approximate VMEM footprint for one grid step (double-buffered blocks)."""
    io = 2 * tile_b * (input_dim + out_sub) * 4            # x / out tiles
    weights = 2 * 4 * (input_dim * HIDDEN + HIDDEN
                       + HIDDEN * HIDDEN + HIDDEN
                       + out_sub * HIDDEN + out_sub)       # resident params
    interm = 2 * tile_b * HIDDEN * 4                       # h1 / h2 f32
    return io + weights + interm


def _pick_tile_b(b8, input_dim, out_sub):
    budget = 20 * 1024 * 1024
    if b8 <= 256:
        return b8                      # single block; block dims == full dims
    # Multiple of 128 (lane-dense transposed-output blocks); ensure >= 2 grid
    # steps once B > 256 so both v7x TensorCores get work.
    max_tile = 512 if b8 >= 1024 else 256
    for cand in (512, 384, 256, 128):
        if cand <= max_tile and _footprint_bytes(cand, input_dim, out_sub) <= budget:
            return cand
    return 128


def dqn_forward(x, prepared_params, action_dim, *, use_bf16=False):
    """Fused MLP forward. x: (B, input_dim) f32 -> (B, action_dim) f32.
    `prepared_params` comes from prepare_params() (call once and reuse).
    `use_bf16=True` casts matmul operands to bf16 (f32 accumulation) — the
    recommended mode on v5e, at the cost of ~1e-2 absolute error."""
    w1, b1, w2, b2, w3t, b3t = prepared_params
    B, input_dim = x.shape
    out_sub = w3t.shape[0]

    b8 = _round_up(B, 8)
    tile_b = _pick_tile_b(b8, input_dim, out_sub)
    b_pad = _round_up(b8, tile_b)
    grid = (b_pad // tile_b,)

    # Typical DQN batch sizes (8/32/64/.../256/512/1024...) hit b_pad == B and
    # x passes through with zero copies; otherwise pad only the batch rows.
    if b_pad != B:
        x_in = jnp.zeros((b_pad, input_dim), x.dtype).at[:B, :].set(x)
    else:
        x_in = x

    flops = 2 * b_pad * HIDDEN * (input_dim + HIDDEN + out_sub)
    bytes_accessed = 4 * (b_pad * input_dim + out_sub * b_pad
                          + input_dim * HIDDEN + HIDDEN
                          + HIDDEN * HIDDEN + HIDDEN
                          + out_sub * HIDDEN + out_sub)
    vmem_limit = int(min(max(2 * _footprint_bytes(tile_b, input_dim, out_sub),
                             32 * 1024 * 1024),
                         64 * 1024 * 1024))

    out_t = pl.pallas_call(
        functools.partial(dqn_kernel, bf16=use_bf16),
        out_shape=jax.ShapeDtypeStruct((out_sub, b_pad), jnp.float32),
        grid=grid,
        in_specs=[
            pl.BlockSpec((tile_b, input_dim), lambda i: (i, 0)),   # x tile (unpadded feature dim)
            pl.BlockSpec((input_dim, HIDDEN), lambda i: (0, 0)),   # w1 (resident)
            pl.BlockSpec((1, HIDDEN), lambda i: (0, 0)),           # b1
            pl.BlockSpec((HIDDEN, HIDDEN), lambda i: (0, 0)),      # w2
            pl.BlockSpec((1, HIDDEN), lambda i: (0, 0)),           # b2
            pl.BlockSpec((out_sub, HIDDEN), lambda i: (0, 0)),     # w3^T (zero-padded rows)
            pl.BlockSpec((out_sub, 1), lambda i: (0, 0)),          # b3^T
        ],
        out_specs=pl.BlockSpec((out_sub, tile_b), lambda i: (0, i)),
        compiler_params=pltpu.CompilerParams(
            dimension_semantics=("parallel",),
            vmem_limit_bytes=vmem_limit,
            allow_input_fusion=[True] * 7,
        ),
        cost_estimate=pl.CostEstimate(flops=flops, transcendentals=0,
                                      bytes_accessed=bytes_accessed),
    )(x_in, w1, b1, w2, b2, w3t, b3t)

    # (out_sub, b_pad) -> (B, action_dim): tiny slice + transpose on the result.
    return out_t[:action_dim, :B].T


def dqn_reference(x, params):
    """Plain-JAX reference for correctness check."""
    w1, b1, w2, b2, w3, b3 = params
    h1 = jnp.maximum(x @ w1 + b1, 0.0)
    h2 = jnp.maximum(h1 @ w2 + b2, 0.0)
    return h2 @ w3 + b3


if __name__ == "__main__":
    key = jax.random.PRNGKey(0)
    kp, kx1, kx2 = jax.random.split(key, 3)

    input_dim = 32
    action_dim = 4

    params = init_params(kp, input_dim, action_dim)
    prep = prepare_params(params)          # one-time padded/transposed weights

    # Small per-env-step inference batch (grid=(1,)).
    x_small = jax.random.normal(kx1, (8, input_dim), dtype=jnp.float32)
    out_small = jax.block_until_ready(dqn_forward(x_small, prep, action_dim))
    ref_small = dqn_reference(x_small, params)
    assert out_small.shape == (8, action_dim), out_small.shape
    assert jnp.allclose(out_small, ref_small, atol=1e-4, rtol=1e-4), \
        "small-batch mismatch vs reference"

    # Replay-buffer-style batch: exercises the multi-block grid path
    # (grid=(2,), "parallel" across both v7x TensorCores) and batch-row padding.
    x_big = jax.random.normal(kx2, (300, input_dim), dtype=jnp.float32)
    out_big = jax.block_until_ready(dqn_forward(x_big, prep, action_dim))
    ref_big = dqn_reference(x_big, params)
    assert out_big.shape == (300, action_dim), out_big.shape
    assert jnp.allclose(out_big, ref_big, atol=1e-4, rtol=1e-4), \
        "large-batch mismatch vs reference"

    print("KERNEL_OK")
</pallas_src>

<mosaic_0001>
module attributes {stable_mosaic.version = 11 : i64} {
  func.func @dqn_kernel(%arg0: i32, %arg1: memref<8x32xf32, #tpu.memory_space<vmem>>, %arg2: memref<32x128xf32, #tpu.memory_space<vmem>>, %arg3: memref<1x128xf32, #tpu.memory_space<vmem>>, %arg4: memref<128x128xf32, #tpu.memory_space<vmem>>, %arg5: memref<1x128xf32, #tpu.memory_space<vmem>>, %arg6: memref<8x128xf32, #tpu.memory_space<vmem>>, %arg7: memref<8x1xf32, #tpu.memory_space<vmem>>, %arg8: memref<8x8xf32, #tpu.memory_space<vmem>>) attributes {dimension_semantics = [#tpu.dimension_semantics<parallel>], iteration_bounds = array<i64: 1>, scalar_prefetch = 0 : i64, scratch_operands = 0 : i64, tpu.core_type = #tpu.core_type<tc>, window_params = [{transform_indices = @transform_0, window_bounds = array<i64: 8, 32>}, {pipeline_mode = #tpu.pipeline_mode<synchronous>, transform_indices = @transform_1, window_bounds = array<i64: 32, 128>}, {pipeline_mode = #tpu.pipeline_mode<synchronous>, transform_indices = @transform_2, window_bounds = array<i64: 1, 128>}, {pipeline_mode = #tpu.pipeline_mode<synchronous>, transform_indices = @transform_3, window_bounds = array<i64: 128, 128>}, {pipeline_mode = #tpu.pipeline_mode<synchronous>, transform_indices = @transform_4, window_bounds = array<i64: 1, 128>}, {pipeline_mode = #tpu.pipeline_mode<synchronous>, transform_indices = @transform_5, window_bounds = array<i64: 8, 128>}, {pipeline_mode = #tpu.pipeline_mode<synchronous>, transform_indices = @transform_6, window_bounds = array<i64: 8, 1>}, {transform_indices = @transform_7, window_bounds = array<i64: 8, 8>}]} {
    %c0 = arith.constant 0 : index
    %c0_0 = arith.constant 0 : index
    %0 = vector.load %arg1[%c0, %c0_0] : memref<8x32xf32, #tpu.memory_space<vmem>>, vector<8x32xf32>
    %c0_1 = arith.constant 0 : index
    %c0_2 = arith.constant 0 : index
    %1 = vector.load %arg2[%c0_1, %c0_2] : memref<32x128xf32, #tpu.memory_space<vmem>>, vector<32x128xf32>
    %cst = arith.constant dense<0.000000e+00> : vector<8x128xf32>
    %2 = tpu.matmul %0, %1, %cst {dimension_numbers = #tpu.dot_dimension_numbers<[1], [0], [0], [1], [0, 0, 1, 1], [], []>} : vector<8x32xf32>, vector<32x128xf32>, vector<8x128xf32> -> vector<8x128xf32>
    %c0_3 = arith.constant 0 : index
    %c0_4 = arith.constant 0 : index
    %3 = vector.load %arg3[%c0_3, %c0_4] : memref<1x128xf32, #tpu.memory_space<vmem>>, vector<1x128xf32>
    %4 = vector.broadcast %3 : vector<1x128xf32> to vector<8x128xf32>
    %5 = arith.addf %2, %4 : vector<8x128xf32>
    %cst_5 = arith.constant 0.000000e+00 : f32
    %6 = vector.broadcast %cst_5 : f32 to vector<8x128xf32>
    %7 = arith.maximumf %5, %6 : vector<8x128xf32>
    %c0_6 = arith.constant 0 : index
    %c0_7 = arith.constant 0 : index
    %8 = vector.load %arg4[%c0_6, %c0_7] : memref<128x128xf32, #tpu.memory_space<vmem>>, vector<128x128xf32>
    %cst_8 = arith.constant dense<0.000000e+00> : vector<8x128xf32>
    %9 = tpu.matmul %7, %8, %cst_8 {dimension_numbers = #tpu.dot_dimension_numbers<[1], [0], [0], [1], [0, 0, 1, 1], [], []>} : vector<8x128xf32>, vector<128x128xf32>, vector<8x128xf32> -> vector<8x128xf32>
    %c0_9 = arith.constant 0 : index
    %c0_10 = arith.constant 0 : index
    %10 = vector.load %arg5[%c0_9, %c0_10] : memref<1x128xf32, #tpu.memory_space<vmem>>, vector<1x128xf32>
    %11 = vector.broadcast %10 : vector<1x128xf32> to vector<8x128xf32>
    %12 = arith.addf %9, %11 : vector<8x128xf32>
    %cst_11 = arith.constant 0.000000e+00 : f32
    %13 = vector.broadcast %cst_11 : f32 to vector<8x128xf32>
    %14 = arith.maximumf %12, %13 : vector<8x128xf32>
    %c0_12 = arith.constant 0 : index
    %c0_13 = arith.constant 0 : index
    %15 = vector.load %arg6[%c0_12, %c0_13] : memref<8x128xf32, #tpu.memory_space<vmem>>, vector<8x128xf32>
    %cst_14 = arith.constant dense<0.000000e+00> : vector<8x8xf32>
    %16 = tpu.matmul %15, %14, %cst_14 {dimension_numbers = #tpu.dot_dimension_numbers<[1], [1], [0], [0], [0, 0, 1, 0], [], []>} : vector<8x128xf32>, vector<8x128xf32>, vector<8x8xf32> -> vector<8x8xf32>
    %c0_15 = arith.constant 0 : index
    %c0_16 = arith.constant 0 : index
    %17 = vector.load %arg7[%c0_15, %c0_16] : memref<8x1xf32, #tpu.memory_space<vmem>>, vector<8x1xf32>
    %18 = vector.broadcast %17 : vector<8x1xf32> to vector<8x8xf32>
    %19 = arith.addf %16, %18 : vector<8x8xf32>
    %c0_17 = arith.constant 0 : index
    %c0_18 = arith.constant 0 : index
    %20 = vector.load %arg8[%c0_17, %c0_18] : memref<8x8xf32, #tpu.memory_space<vmem>>, vector<8x8xf32>
    tpu.vector_store %arg8[%c0_17, %c0_18], %19 {strides = array<i32>} : memref<8x8xf32, #tpu.memory_space<vmem>>, vector<8x8xf32>,
    return
  }
  func.func @transform_0(%arg0: i32) -> (i32, i32) {
    %c0_i32 = arith.constant 0 : i32
    %c0_i32_0 = arith.constant 0 : i32
    return %arg0, %c0_i32 : i32, i32
  }
  func.func @transform_1(%arg0: i32) -> (i32, i32) {
    %c0_i32 = arith.constant 0 : i32
    %c0_i32_0 = arith.constant 0 : i32
    %c0_i32_1 = arith.constant 0 : i32
    return %c0_i32, %c0_i32_0 : i32, i32
  }
  func.func @transform_2(%arg0: i32) -> (i32, i32) {
    %c0_i32 = arith.constant 0 : i32
    %c0_i32_0 = arith.constant 0 : i32
    %c0_i32_1 = arith.constant 0 : i32
    return %c0_i32, %c0_i32_0 : i32, i32
  }
  func.func @transform_3(%arg0: i32) -> (i32, i32) {
    %c0_i32 = arith.constant 0 : i32
    %c0_i32_0 = arith.constant 0 : i32
    %c0_i32_1 = arith.constant 0 : i32
    return %c0_i32, %c0_i32_0 : i32, i32
  }
  func.func @transform_4(%arg0: i32) -> (i32, i32) {
    %c0_i32 = arith.constant 0 : i32
    %c0_i32_0 = arith.constant 0 : i32
    %c0_i32_1 = arith.constant 0 : i32
    return %c0_i32, %c0_i32_0 : i32, i32
  }
  func.func @transform_5(%arg0: i32) -> (i32, i32) {
    %c0_i32 = arith.constant 0 : i32
    %c0_i32_0 = arith.constant 0 : i32
    %c0_i32_1 = arith.constant 0 : i32
    return %c0_i32, %c0_i32_0 : i32, i32
  }
  func.func @transform_6(%arg0: i32) -> (i32, i32) {
    %c0_i32 = arith.constant 0 : i32
    %c0_i32_0 = arith.constant 0 : i32
    %c0_i32_1 = arith.constant 0 : i32
    return %c0_i32, %c0_i32_0 : i32, i32
  }
  func.func @transform_7(%arg0: i32) -> (i32, i32) {
    %c0_i32 = arith.constant 0 : i32
    %c0_i32_0 = arith.constant 0 : i32
    return %c0_i32, %arg0 : i32, i32
  }
}

</mosaic_0001>

<bundles_post_ra>
// kernel: tpu_custom_call.1
= control target key start
LH: loop header
LB: loop body
LE: loop exit
PB: predicated region body
PF: predicated region fallthrough
CT: control target
= control target key end

     0   :  { %12 = vsyncpa [#allocation3], 0  ;;  %s653_s0 = inlined_call_operand.vmem [shape: f32[8,32], index: 0, kind: input, shape index: {}]   ;;  %s654_s1 = inlined_call_operand.hbm [shape: f32[32,128], index: 1, kind: input, shape index: {}]   ;;  %s655_s2 = inlined_call_operand.hbm [shape: f32[1,128], index: 2, kind: input, shape index: {}]   ;;  %s656_s3 = inlined_call_operand.hbm [shape: f32[128,128], index: 3, kind: input, shape index: {}]   ;;  %s657_s4 = inlined_call_operand.hbm [shape: f32[1,128], index: 4, kind: input, shape index: {}]   ;;  %s658_s5 = inlined_call_operand.vmem [shape: f32[8,128], index: 5, kind: input, shape index: {}]   ;;  %s659_s6 = inlined_call_operand.vmem [shape: f32[8,1], index: 6, kind: input, shape index: {}]   ;;  %s660_s7 = inlined_call_operand.hbm [shape: f32[8,8], index: 7, kind: output, shape index: {}]  }
   0x1   :  { %13 = vsyncpa [#allocation6], 0 }
   0x2   :  { %14 = vsyncpa [#allocation9], 0 }
   0x3   :  { %15 = vsyncpa [#allocation4], 0  ;;  %s552_s24 = smov [#allocation5]   ;;  %s553_s26 = smov [#allocation2]  }
   0x4   :  { %s36_s25 = sshll.u32 %s552_s24, 4  ;;  %s23_s27 = sshll.u32 %s553_s26, 4  ;;  %s37_s25 = int_to_ptr.vmem [resolvable:$true] %s36_s25  ;;  %s24_s27 = int_to_ptr.vmem [resolvable:$true] %s23_s27 }
   0x5   :  { %s452_s28 = scalar_lea.vmem %s37_s25, 16  ;;  %s456_s29 = scalar_lea.vmem %s37_s25, 32 }
   0x6   :  { %p453_p0 = scmp.ne.s32.totalorder %s37_s25, %s452_s28  ;;  %p457_p1 = scmp.lt.s32.totalorder %s37_s25, %s37_s25 }
   0x7   :  { %p458_p2 = scmp.lt.s32.totalorder %s456_s29, %s452_s28 }
   0x9   :  { %p459_p3 = por %p458_p2, %p457_p1 }
   0xb   :  { %p460_p4 = pnand %p459_p3, %p453_p0 }
   0xd   :  { %463 = shalt.err (!%p460_p4)
}
   0xe   :  { %39 = dma.hbm_to_vmem [thread:$0]  %s655_s2, 16, %s37_s25, [#allocation6]  }
   0xf   :  { %s472_s9 = scalar_lea.vmem %s24_s27, 512  ;;  %p477_p6 = scmp.lt.s32.totalorder %s24_s27, %s24_s27 }
  0x10   :  { %p473_p5 = scmp.ne.s32.totalorder %s24_s27, %s472_s9  ;;  %p478_p7 = scmp.lt.s32.totalorder %s472_s9, %s472_s9 }
  0x12   :  { %p479_p8 = por %p478_p7, %p477_p6 }
  0x14   :  { %p480_p9 = pnand %p479_p8, %p473_p5 }
  0x16   :  { %483 = shalt.err (!%p480_p9)
}
  0x17   :  { %s554_s10 = smov 128   ;;  %s555_s11 = smov 8  }
  0x18   :  { %29 = dma.hbm_to_vmem [thread:$0]  %s654_s1, 512, %s24_s27, [#allocation3], %s554_s10, %s554_s10, %s555_s11  }
  0x19   :  { %s556_s14 = smov [#allocation7]   ;;  %s557_s16 = smov [#allocation8]  }
  0x1a   :  { %s45_s15 = sshll.u32 %s556_s14, 4  ;;  %s58_s17 = sshll.u32 %s557_s16, 4  ;;  %s46_s15 = int_to_ptr.vmem [resolvable:$true] %s45_s15  ;;  %s59_s17 = int_to_ptr.vmem [resolvable:$true] %s58_s17 }
  0x1b   :  { %s492_s2 = scalar_lea.vmem %s46_s15, 2048  ;;  %p497_p11 = scmp.lt.s32.totalorder %s46_s15, %s46_s15 }
  0x1c   :  { %p493_p10 = scmp.ne.s32.totalorder %s46_s15, %s492_s2  ;;  %p498_p12 = scmp.lt.s32.totalorder %s492_s2, %s492_s2 }
  0x1e   :  { %p499_p13 = por %p498_p12, %p497_p11 }
  0x20   :  { %p500_p0 = pnand %p499_p13, %p493_p10 }
  0x22   :  { %503 = shalt.err (!%p500_p0)
}
  0x23   :  { %51 = dma.hbm_to_vmem [thread:$0]  %s656_s3, 2048, %s46_s15, [#allocation6], %s554_s10, %s554_s10, %s555_s11  }
  0x24   :  { %s512_s20 = scalar_lea.vmem %s59_s17, 16  ;;  %s516_s1 = scalar_lea.vmem %s59_s17, 32 }
  0x25   :  { %p513_p1 = scmp.ne.s32.totalorder %s59_s17, %s512_s20  ;;  %p517_p2 = scmp.lt.s32.totalorder %s59_s17, %s59_s17 }
  0x26   :  { %p518_p3 = scmp.lt.s32.totalorder %s516_s1, %s512_s20 }
  0x28   :  { %p519_p4 = por %p518_p3, %p517_p2 }
  0x2a   :  { %p520_p5 = pnand %p519_p4, %p513_p1 }
  0x2c   :  { %523 = shalt.err (!%p520_p5)
}
  0x2d   :  { %61 = dma.hbm_to_vmem [thread:$0]  %s657_s4, 16, %s59_s17, [#allocation9]  }
  0x2e   :  { %544 = dma.done.wait [#allocation3], 512  }
  0x2f   :  { %545 = vsyncadd [#allocation3], 4294966784 }
  0x30   :  { %546 = dma.done.wait [#allocation6], 2064  }
  0x31   :  { %547 = vsyncadd [#allocation6], 4294965232 }
  0x32   :  { %548 = dma.done.wait [#allocation9], 16  }
  0x33   :  { %549 = vsyncadd [#allocation9], 4294967280  ;;  %v558_v0 = vmov 0.0   ;;  %vm559_vm0 = vmmov 0   ;;  %v82_v1 = vld [vmem:[#allocation2 + $0x18] sm:$0xff]  ;;  %v81_v2 = vld [vmem:[#allocation2 + $0x10] sm:$0xff] }
  0x34   :  { %382 = vmatprep.subr.mxu0 %v558_v0  ;;  %390 = vmatprep.mubr.msk.f32.mxu0 %vm559_vm0, %v558_v0  ;;  %v180_v3 = vld [vmem:[#allocation7 + $0x78] sm:$0xff]  ;;  %v80_v4 = vld [vmem:[#allocation2 + $0x8] sm:$0xff]  ;;  %v179_v5 = vld [vmem:[#allocation7 + $0x70] sm:$0xff]  ;;  %vm90_vm1 = vcmask 261120   ;;  %v560_v28 = vmov 0   ;;  %s561_s26 = smov [#allocation10]  }
  0x35   :  { %393 = vmatprep.subr.mxu1 %v558_v0  ;;  %425 = vmatprep.mubr.msk.f32.mxu1 %vm559_vm0, %v558_v0  ;;  %v178_v6 = vld [vmem:[#allocation7 + $0x68] sm:$0xff]  ;;  %v79_v7 = vld [vmem:[#allocation2] sm:$0xff]  ;;  %v175_v11 = vld [vmem:[#allocation7 + $0x50] sm:$0xff]  ;;  %s344_s27 = sshll.u32 %s561_s26, 4  ;;  %vm336_vm2 = vcmask 64512   ;;  %s345_s27 = int_to_ptr.vmem [resolvable:$true] %s344_s27 }
  0x36   :  { %383 = vmatpush3.msra.mxu0 %v82_v1  ;;  %394 = vmatpush3.msra.mxu1 %v180_v3  ;;  %v78_v8 = vld [vmem:[%s653_s0] sm:$0xff]  ;;  %v174_v12 = vld [vmem:[#allocation7 + $0x48] sm:$0xff]  ;;  %v171_v15 = vld [vmem:[#allocation7 + $0x30] sm:$0xff]  ;;  %p529_p7 = scmp.lt.s32.totalorder %s345_s27, %s345_s27 }
  0x37   :  { %384 = vmatprep.subr.mxu0 %v558_v0  ;;  %395 = vmatprep.subr.mxu1 %v558_v0  ;;  %v177_v9 = vld [vmem:[#allocation7 + $0x60] sm:$0xff]  ;;  %v176_v10 = vld [vmem:[#allocation7 + $0x58] sm:$0xff]  ;;  %v170_v16 = vld [vmem:[#allocation7 + $0x28] sm:$0xff] }
  0x38   :  { %385 = vmatpush3.msra.mxu0 %v81_v2  ;;  %396 = vmatpush3.msra.mxu1 %v179_v5  ;;  %v173_v13 = vld [vmem:[#allocation7 + $0x40] sm:$0xff]  ;;  %v172_v14 = vld [vmem:[#allocation7 + $0x38] sm:$0xff]  ;;  %v167_v19 = vld [vmem:[#allocation7 + $0x10] sm:$0xff] }
  0x39   :  { %386 = vmatprep.subr.mxu0 %v558_v0  ;;  %397 = vmatprep.subr.mxu1 %v558_v0  ;;  %v169_v17 = vld [vmem:[#allocation7 + $0x20] sm:$0xff]  ;;  %v168_v18 = vld [vmem:[#allocation7 + $0x18] sm:$0xff]  ;;  %v166_v20 = vld [vmem:[#allocation7 + $0x8] sm:$0xff] }
  0x3a   :  { %387 = vmatpush3.msra.mxu0 %v80_v4  ;;  %398 = vmatpush3.msra.mxu1 %v178_v6  ;;  %v165_v21 = vld [vmem:[#allocation7] sm:$0xff]  ;;  %v355_v22 = vld [vmem:[#allocation5] ss:$0 sm:$0xff] }
  0x3b   :  { %388 = vmatprep.subr.mxu0 %v558_v0  ;;  %399 = vmatprep.subr.mxu1 %v558_v0  ;;  %v260_v27 = vld [vmem:[%s659_s6] sm:$0xff]  ;;  %s524_s6 = scalar_lea.vmem %s345_s27, 128 }
  0x3c   :  { %389 = vmatpush3.msra.mxu0 %v79_v7  ;;  %400 = vmatpush3.msra.mxu1 %v177_v9  ;;  %v357_v29 = vld [vmem:[#allocation8] ss:$0 sm:$0xff]  ;;  %p525_p6 = scmp.ne.s32.totalorder %s345_s27, %s524_s6  ;;  %p530_p8 = scmp.lt.s32.totalorder %s524_s6, %s524_s6 }
  0x3d   :  { %391 = vmatmul.mubr.msk.f32.vlgmr.msra.gmra.mxu0 %vm90_vm1, %v78_v8  ;;  %401 = vmatprep.subr.mxu1 %v558_v0  ;;  %v259_v34 = vld [vmem:[%s658_s5] sm:$0xff] }
  0x3e   :  { %428 = vmatprep.subr.mxu0 %v558_v0  ;;  %402 = vmatpush3.msra.mxu1 %v176_v10  ;;  %p531_p9 = por %p530_p8, %p529_p7 }
  0x3f   :  { %430 = vmatprep.mubr.msk.f32.mxu0 %vm559_vm0, %v558_v0  ;;  %403 = vmatprep.subr.mxu1 %v558_v0 }
  0x40   :  { %404 = vmatpush3.msra.mxu1 %v175_v11  ;;  %443 = vset.pattern.permute.xlu0 %v560_v28  ;;  %p532_p10 = pnand %p531_p9, %p525_p6 }
  0x41   :  { %405 = vmatprep.subr.mxu1 %v558_v0  ;;  %263 = vperm.xlu0 %443, %v260_v27  }
  0x42   :  { %406 = vmatpush3.msra.mxu1 %v174_v12 }
  0x43   :  { %407 = vmatprep.subr.mxu1 %v558_v0 }
  0x44   :  { %408 = vmatpush3.msra.mxu1 %v173_v13 }
  0x45   :  { %409 = vmatprep.subr.mxu1 %v558_v0 }
  0x46   :  { %410 = vmatpush3.msra.mxu1 %v172_v14 }
  0x47   :  { %411 = vmatprep.subr.mxu1 %v558_v0 }
  0x48   :  { %412 = vmatpush3.msra.mxu1 %v171_v15 }
  0x49   :  { %413 = vmatprep.subr.mxu1 %v558_v0 }
  0x4a   :  { %414 = vmatpush3.msra.mxu1 %v170_v16 }
  0x4b   :  { %415 = vmatprep.subr.mxu1 %v558_v0 }
  0x4c   :  { %416 = vmatpush3.msra.mxu1 %v169_v17 }
  0x4d   :  { %417 = vmatprep.subr.mxu1 %v558_v0 }
  0x4e   :  { %418 = vmatpush3.msra.mxu1 %v168_v18 }
  0x4f   :  { %419 = vmatprep.subr.mxu1 %v558_v0 }
  0x50   :  { %420 = vmatpush3.msra.mxu1 %v167_v19 }
  0x51   :  { %421 = vmatprep.subr.mxu1 %v558_v0 }
  0x52   :  { %422 = vmatpush3.msra.mxu1 %v166_v20 }
  0x53   :  { %423 = vmatprep.subr.mxu1 %v558_v0 }
  0x54   :  { %424 = vmatpush3.msra.mxu1 %v165_v21 }
  0xbc   :  { %v264_v35 = vpop.permute.xlu0 %263 }
  0xfd   :  { %v160_v23 = vpop.f32.mrf.mxu0 }
  0xfe   :  { %v161_v24 = vadd.f32 %v355_v22, %v160_v23 }
  0xff   :  { %v392_v25 = vpop.f32.mrf.mxu0 }
 0x100   :  { %v164_v26 = vmax.f32 %v161_v24, 0.0 }
 0x102   :  { %426 = vmatmul.mubr.f32.vlgmr.msra.gmra.mxu1 %v164_v26 }
 0x1c2   :  { %v254_v30 = vpop.f32.mrf.mxu1 }
 0x1c3   :  { %v255_v31 = vadd.f32 %v357_v29, %v254_v30 }
 0x1c4   :  { %v427_v32 = vpop.f32.mrf.mxu1 }
 0x1c5   :  { %v258_v33 = vmax.f32 %v255_v31, 0.0 }
 0x1c7   :  { %429 = vmatpush3.xpose.msra.mxu0 %v258_v33 }
 0x1ca   :  { %431 = vmatmul.mubr.f32.vlgmr.msra.gmra.mxu0 %v259_v34 }
 0x28a   :  { %v332_v36 = vpop.f32.mrf.mxu0 }
 0x28b   :  { %v333_v37 = vadd.f32 %v332_v36, %v264_v35 }
 0x28c   :  { %v432_v38 = vpop.f32.mrf.mxu0 }
 0x28d   :  { %337 = vst.msk [vmem:[#allocation10] sm:$0xff] %vm336_vm2, %v333_v37 }
 0x28e   :  { %535 = shalt.err (!%p532_p10)
}
 0x28f   :  { %347 = dma.vmem_to_hbm [thread:$0]  %s345_s27, 128, %s660_s7, [#allocation4]  }
 0x290   :  { %550 = dma.done.wait [#allocation4], 128  }
 0x291   :  { %551 = vsyncadd [#allocation4], 4294967168 }
 0x292   :  { %351 = vsyncpa [#allocation3], 1 }
 0x293   :  { %352 = vsyncpa [#allocation6], 1 }
 0x294   :  { %353 = vsyncpa [#allocation9], 1 }
 0x295   :  { %354 = vsyncpa [#allocation4], 1 }

</bundles_post_ra>
